<compile_context>
chip_gen: v7x
topology: tpu7x:2x2x1
jax: 0.10.0
libtpu: 0.0.40
codegen_flags: <defaults>
</compile_context>

<pallas_src>
import math
import numpy as np
import jax
import jax.numpy as jnp
from jax import lax
from jax.experimental import pallas as pl
from jax.experimental.pallas import tpu as pltpu

EPS_BN = 1e-5
_LANE = 128                        # matmul operands are padded to this lane width
_VMEM_LIMIT = 32 * 1024 * 1024     # explicit scoped-VMEM limit, safe on v5e/v6e/v7x
_MIN_SPLIT = 256                   # split into >=2 grid steps once padded batch >= this


def _round_up(x, m):
    return ((x + m - 1) // m) * m


def _choose_tiling(n, cap):
    """Pick (tile_n, n_pad): tile rows (multiple of 8, <= cap) and padded batch
    (multiple of tile_n).  Pads only a handful of rows, and uses >= 2
    (preferably even) grid steps when the batch is big enough so both v7x
    TensorCores get work (harmless ~0.35us/step on single-TC v5e/v6e)."""
    n8 = _round_up(n, 8)
    steps = -(-n8 // cap)                  # ceil div
    if steps == 1:
        if n8 >= _MIN_SPLIT:
            steps = 2                      # don't collapse to one step on v7x
    elif steps % 2 == 1:
        steps += 1                         # even step count balances the 2 TCs
    tn = _round_up(-(-n8 // steps), 8)
    return tn, tn * steps


# ---------------------------------------------------------------------------
# TransE:  score[n, r] = sigmoid(-|| h[n] + rel[r] - t[n] ||_2)
# Expanded as ||d||^2 + 2*d.rel[r] + ||rel[r]||^2 with d = h - t.  The relation
# matrix is passed pre-transposed and zero-padded to 128 lanes so the MXU
# matmul is fully lane-dense; the (TN, R) tail + store only touch real columns.
# (Expanded form can cancel in f32 when h + rel ~= t; clamped >= 0, and well
#  within the 1e-3 tolerance used here.)
# ---------------------------------------------------------------------------
def _transe_kernel(h_ref, t_ref, relt_ref, relsq_ref, out_ref):
    r = out_ref.shape[-1]                             # true label count R
    d = h_ref[...] - t_ref[...]                       # (TN, D)
    d_sq = jnp.sum(d * d, axis=-1, keepdims=True)     # (TN, 1)
    # cross[n, j] = d[n] . rel[j]   (rel pre-transposed: (D, PAD), zero pad lanes)
    cross = jnp.dot(d, relt_ref[...], preferred_element_type=jnp.float32)   # (TN, PAD)
    sq = jnp.maximum(d_sq + 2.0 * cross[:, :r] + relsq_ref[...][:, :r], 0.0)  # (TN, R)
    out_ref[...] = jax.nn.sigmoid(-jnp.sqrt(sq))      # single (TN, R) store


def transe_score(h, t, rel, *, tile_n=1024):
    N, D = h.shape
    R = rel.shape[0]
    pad_r = _round_up(R, _LANE)

    # Parameter-only glue: transposed + lane-padded relations and their squared norms.
    relt = jnp.zeros((D, pad_r), jnp.float32).at[:, :R].set(rel.T)
    relsq = jnp.zeros((1, pad_r), jnp.float32).at[:, :R].set(
        jnp.sum(rel * rel, axis=-1)[None, :])

    tn, n_pad = _choose_tiling(N, tile_n)
    if n_pad != N:                                    # ragged batch: small pad, slice outside
        h = jnp.pad(h, ((0, n_pad - N), (0, 0)))
        t = jnp.pad(t, ((0, n_pad - N), (0, 0)))

    out = pl.pallas_call(
        _transe_kernel,
        out_shape=jax.ShapeDtypeStruct((n_pad, R), jnp.float32),
        grid=(n_pad // tn,),
        in_specs=[
            pl.BlockSpec((tn, D), lambda i: (i, 0)),
            pl.BlockSpec((tn, D), lambda i: (i, 0)),
            pl.BlockSpec((D, pad_r), lambda i: (0, 0)),   # constant block: fetched once
            pl.BlockSpec((1, pad_r), lambda i: (0, 0)),   # constant block: fetched once
        ],
        out_specs=pl.BlockSpec((tn, R), lambda i: (i, 0)),  # last dim == full array dim
        compiler_params=pltpu.CompilerParams(
            dimension_semantics=("parallel",),
            vmem_limit_bytes=_VMEM_LIMIT),
    )(h, t, relt, relsq)
    return out[:N]


# ---------------------------------------------------------------------------
# TuckER:  score[n, r] = sigmoid( BN0(h)[n] @ W_mat[r] @ BN2(t)[n]^T )
# W_mat[r] = sum_k rel[r,k] * W[k] is parameter-only and folded in the wrapper
# into W_big : (D, R*D) with W_big[i, r*D+j] = W_mat[r, i, j].  BatchNorm (eval
# mode) is folded into scale/shift so the kernel does one FMA per operand.
# The kernel does ONE wide MXU matmul, R lane reductions and ONE store.
# ---------------------------------------------------------------------------
def _make_tucker_kernel(R, D):
    def kernel(h_ref, t_ref, wbig_ref, bnh_ref, bnt_ref, out_ref):
        h = h_ref[...] * bnh_ref[0:1, :] + bnh_ref[1:2, :]       # (TN, D) BN-folded
        t = t_ref[...] * bnt_ref[0:1, :] + bnt_ref[1:2, :]       # (TN, D) BN-folded
        # One long MXU push instead of R short ones:
        #   hw[n, r*D + j] = sum_i h[n, i] * W_mat[r, i, j]
        hw = jnp.dot(h, wbig_ref[...], preferred_element_type=jnp.float32)   # (TN, R*D)
        tn = h.shape[0]
        lane = lax.broadcasted_iota(jnp.int32, (tn, R), 1)
        s = jnp.zeros((tn, R), jnp.float32)
        for r in range(R):   # R = label_num is small; lane reductions hit the XLU slot
            s_r = jnp.sum(hw[:, r * D:(r + 1) * D] * t, axis=-1, keepdims=True)  # (TN, 1)
            s = jnp.where(lane == r, s_r, s)     # place column r (pure VPU select)
        out_ref[...] = jax.nn.sigmoid(s)         # single (TN, R) store, no zero-init
        # TODO(synk): training-mode Dropout / batch-statistics BatchNorm not implemented
        # (inference semantics: dropout = identity, BN uses running stats).
    return kernel


def tucker_score(h, t, rel, W, bn0, bn2, *, tile_n=1024):
    N, D = h.shape
    R = rel.shape[0]

    # Parameter-only glue (identical math to torch.mm(rel, W.view(D, -1))):
    # W_mat[r] = sum_k rel[r,k] * W[k]  ->  W_big[i, r*D + j] = W_mat[r, i, j]
    w_mat = (rel @ W.reshape(D, D * D)).reshape(R, D, D)
    w_big = jnp.transpose(w_mat, (1, 0, 2)).reshape(D, R * D)

    def _fold_bn(bn):   # bn = [gamma, beta, running_mean, running_var] : (4, D)
        scale = bn[0] * lax.rsqrt(bn[3] + EPS_BN)
        shift = bn[1] - bn[2] * scale
        return jnp.stack([scale, shift]).astype(jnp.float32)     # (2, D)

    bnh = _fold_bn(bn0)
    bnt = _fold_bn(bn2)

    tn, n_pad = _choose_tiling(N, tile_n)
    if n_pad != N:                                    # ragged batch: small pad, slice outside
        h = jnp.pad(h, ((0, n_pad - N), (0, 0)))
        t = jnp.pad(t, ((0, n_pad - N), (0, 0)))

    out = pl.pallas_call(
        _make_tucker_kernel(R, D),
        out_shape=jax.ShapeDtypeStruct((n_pad, R), jnp.float32),
        grid=(n_pad // tn,),
        in_specs=[
            pl.BlockSpec((tn, D), lambda i: (i, 0)),
            pl.BlockSpec((tn, D), lambda i: (i, 0)),
            pl.BlockSpec((D, R * D), lambda i: (0, 0)),   # constant block: fetched once
            pl.BlockSpec((2, D), lambda i: (0, 0)),
            pl.BlockSpec((2, D), lambda i: (0, 0)),
        ],
        out_specs=pl.BlockSpec((tn, R), lambda i: (i, 0)),  # last dim == full array dim
        compiler_params=pltpu.CompilerParams(
            dimension_semantics=("parallel",),
            vmem_limit_bytes=_VMEM_LIMIT),
    )(h, t, w_big, bnh, bnt)
    return out[:N]


if __name__ == "__main__":
    # Small shapes implied by the forward: N entity pairs, hidden_dim D, label_num R.
    # N=300 deliberately exercises the ragged-batch padding + multi-tile (grid=2) path.
    N, D, R = 300, 128, 4
    key = jax.random.PRNGKey(0)
    kh, kt, kr, kw = jax.random.split(key, 4)
    h = 0.1 * jax.random.normal(kh, (N, D), jnp.float32)
    t = 0.1 * jax.random.normal(kt, (N, D), jnp.float32)

    # deterministic parameter init (xavier_uniform, like the torch module)
    b_rel = math.sqrt(6.0 / (R + D))
    rel = jax.random.uniform(kr, (R, D), jnp.float32, -b_rel, b_rel)
    b_w = math.sqrt(6.0 / (2.0 * D * D))
    W = jax.random.uniform(kw, (D, D, D), jnp.float32, -b_w, b_w)
    # BatchNorm1d defaults: gamma=1, beta=0, running_mean=0, running_var=1
    bn0 = jnp.stack([jnp.ones(D), jnp.zeros(D), jnp.zeros(D), jnp.ones(D)]).astype(jnp.float32)
    bn2 = bn0

    s_transe = jax.block_until_ready(transe_score(h, t, rel))
    s_tucker = jax.block_until_ready(tucker_score(h, t, rel, W, bn0, bn2))

    # float64 numpy reference of the torch forward (inference semantics)
    h64 = np.asarray(h, np.float64)
    t64 = np.asarray(t, np.float64)
    r64 = np.asarray(rel, np.float64)
    W64 = np.asarray(W, np.float64)

    ref_transe = 1.0 / (1.0 + np.exp(
        np.linalg.norm(h64[:, None, :] + r64[None, :, :] - t64[:, None, :], axis=-1)))

    scale = 1.0 / np.sqrt(1.0 + EPS_BN)     # eval-mode BN with default stats
    hb, tb = h64 * scale, t64 * scale
    wm = (r64 @ W64.reshape(D, D * D)).reshape(R, D, D)
    ref_tucker = 1.0 / (1.0 + np.exp(-np.einsum('ni,rij,nj->nr', hb, wm, tb)))

    assert s_transe.shape == (N, R) and s_tucker.shape == (N, R)
    np.testing.assert_allclose(np.asarray(s_transe), ref_transe, atol=1e-3, rtol=0)
    np.testing.assert_allclose(np.asarray(s_tucker), ref_tucker, atol=1e-3, rtol=0)
    print("KERNEL_OK")
</pallas_src>

<mosaic_0001>
module attributes {stable_mosaic.version = 11 : i64} {
  func.func @_transe_kernel(%arg0: i32, %arg1: memref<152x128xf32, #tpu.memory_space<vmem>>, %arg2: memref<152x128xf32, #tpu.memory_space<vmem>>, %arg3: memref<128x128xf32, #tpu.memory_space<vmem>>, %arg4: memref<1x128xf32, #tpu.memory_space<vmem>>, %arg5: memref<152x4xf32, #tpu.memory_space<vmem>>) attributes {dimension_semantics = [#tpu.dimension_semantics<parallel>], iteration_bounds = array<i64: 2>, scalar_prefetch = 0 : i64, scratch_operands = 0 : i64, tpu.core_type = #tpu.core_type<tc>, window_params = [{transform_indices = @transform_0, window_bounds = array<i64: 152, 128>}, {transform_indices = @transform_1, window_bounds = array<i64: 152, 128>}, {pipeline_mode = #tpu.pipeline_mode<synchronous>, transform_indices = @transform_2, window_bounds = array<i64: 128, 128>}, {pipeline_mode = #tpu.pipeline_mode<synchronous>, transform_indices = @transform_3, window_bounds = array<i64: 1, 128>}, {transform_indices = @transform_4, window_bounds = array<i64: 152, 4>}]} {
    %c0 = arith.constant 0 : index
    %c0_0 = arith.constant 0 : index
    %0 = vector.load %arg1[%c0, %c0_0] : memref<152x128xf32, #tpu.memory_space<vmem>>, vector<152x128xf32>
    %c0_1 = arith.constant 0 : index
    %c0_2 = arith.constant 0 : index
    %1 = vector.load %arg2[%c0_1, %c0_2] : memref<152x128xf32, #tpu.memory_space<vmem>>, vector<152x128xf32>
    %2 = arith.subf %0, %1 : vector<152x128xf32>
    %3 = arith.mulf %2, %2 : vector<152x128xf32>
    %cst = arith.constant dense<0.000000e+00> : vector<152xf32>
    %4 = vector.multi_reduction <add>, %3, %cst [1] : vector<152x128xf32> to vector<152xf32>
    %5 = vector.shape_cast %4 : vector<152xf32> to vector<152x1xf32>
    %c0_3 = arith.constant 0 : index
    %c0_4 = arith.constant 0 : index
    %6 = vector.load %arg3[%c0_3, %c0_4] : memref<128x128xf32, #tpu.memory_space<vmem>>, vector<128x128xf32>
    %cst_5 = arith.constant dense<0.000000e+00> : vector<152x128xf32>
    %7 = tpu.matmul %2, %6, %cst_5 {dimension_numbers = #tpu.dot_dimension_numbers<[1], [0], [0], [1], [0, 0, 1, 1], [], []>} : vector<152x128xf32>, vector<128x128xf32>, vector<152x128xf32> -> vector<152x128xf32>
    %8 = vector.extract_strided_slice %7 {offsets = [0, 0], sizes = [152, 4], strides = [1, 1]} : vector<152x128xf32> to vector<152x4xf32>
    %cst_6 = arith.constant 2.000000e+00 : f32
    %9 = vector.broadcast %cst_6 : f32 to vector<152x4xf32>
    %10 = arith.mulf %9, %8 : vector<152x4xf32>
    %11 = vector.broadcast %5 : vector<152x1xf32> to vector<152x4xf32>
    %12 = arith.addf %11, %10 : vector<152x4xf32>
    %c0_7 = arith.constant 0 : index
    %c0_8 = arith.constant 0 : index
    %13 = vector.load %arg4[%c0_7, %c0_8] : memref<1x128xf32, #tpu.memory_space<vmem>>, vector<1x128xf32>
    %14 = vector.extract_strided_slice %13 {offsets = [0, 0], sizes = [1, 4], strides = [1, 1]} : vector<1x128xf32> to vector<1x4xf32>
    %15 = vector.broadcast %14 : vector<1x4xf32> to vector<152x4xf32>
    %16 = arith.addf %12, %15 : vector<152x4xf32>
    %cst_9 = arith.constant 0.000000e+00 : f32
    %17 = vector.broadcast %cst_9 : f32 to vector<152x4xf32>
    %18 = arith.maximumf %16, %17 : vector<152x4xf32>
    %19 = math.sqrt %18 : vector<152x4xf32>
    %cst_10 = arith.constant 0.000000e+00 : f32
    %20 = vector.broadcast %cst_10 : f32 to vector<152x4xf32>
    %21 = arith.subf %20, %19 : vector<152x4xf32>
    %22 = arith.negf %21 : vector<152x4xf32>
    %23 = math.exp %22 : vector<152x4xf32>
    %cst_11 = arith.constant 1.000000e+00 : f32
    %24 = vector.broadcast %cst_11 : f32 to vector<152x4xf32>
    %25 = arith.addf %24, %23 : vector<152x4xf32>
    %26 = arith.divf %24, %25 : vector<152x4xf32>
    %c0_12 = arith.constant 0 : index
    %c0_13 = arith.constant 0 : index
    %27 = vector.load %arg5[%c0_12, %c0_13] : memref<152x4xf32, #tpu.memory_space<vmem>>, vector<152x4xf32>
    tpu.vector_store %arg5[%c0_12, %c0_13], %26 {strides = array<i32>} : memref<152x4xf32, #tpu.memory_space<vmem>>, vector<152x4xf32>,
    return
  }
  func.func @transform_0(%arg0: i32) -> (i32, i32) {
    %c0_i32 = arith.constant 0 : i32
    %c0_i32_0 = arith.constant 0 : i32
    return %arg0, %c0_i32 : i32, i32
  }
  func.func @transform_1(%arg0: i32) -> (i32, i32) {
    %c0_i32 = arith.constant 0 : i32
    %c0_i32_0 = arith.constant 0 : i32
    return %arg0, %c0_i32 : i32, i32
  }
  func.func @transform_2(%arg0: i32) -> (i32, i32) {
    %c0_i32 = arith.constant 0 : i32
    %c0_i32_0 = arith.constant 0 : i32
    %c0_i32_1 = arith.constant 0 : i32
    return %c0_i32, %c0_i32_0 : i32, i32
  }
  func.func @transform_3(%arg0: i32) -> (i32, i32) {
    %c0_i32 = arith.constant 0 : i32
    %c0_i32_0 = arith.constant 0 : i32
    %c0_i32_1 = arith.constant 0 : i32
    return %c0_i32, %c0_i32_0 : i32, i32
  }
  func.func @transform_4(%arg0: i32) -> (i32, i32) {
    %c0_i32 = arith.constant 0 : i32
    %c0_i32_0 = arith.constant 0 : i32
    return %arg0, %c0_i32 : i32, i32
  }
}

</mosaic_0001>

<bundles_post_ra>
// kernel: tpu_custom_call.1
= control target key start
LH: loop header
LB: loop body
LE: loop exit
PB: predicated region body
PF: predicated region fallthrough
CT: control target
= control target key end

     0   :  { %9 = vsyncpa [#allocation3], 0  ;;  %s2243_s0 = inlined_call_operand.hbm [shape: f32[304,128], index: 0, kind: input, shape index: {}]   ;;  %s2244_s1 = inlined_call_operand.hbm [shape: f32[304,128], index: 1, kind: input, shape index: {}]   ;;  %s2245_s2 = inlined_call_operand.hbm [shape: f32[128,128], index: 2, kind: input, shape index: {}]   ;;  %s2246_s3 = inlined_call_operand.vmem [shape: f32[1,128], index: 3, kind: input, shape index: {}]   ;;  %s2247_s4 = inlined_call_operand.vmem [shape: f32[304,4], index: 4, kind: output, shape index: {}]  }
   0x1   :  { %11 = vsyncpa [#allocation3 + $0x1], 0 }
   0x2   :  { %12 = vsyncpa [#allocation5], 0 }
   0x3   :  { %14 = vsyncpa [#allocation5 + $0x1], 0  ;;  %s1573_s15 = smov 0   ;;  %s1575_s16 = smov 0  }
   0x4   :  { %s1577_s17 = smov 0   ;;  %s1579_s18 = smov 0  }
   0x5 LB: > { %s1592_s19 = sadd.s32 4294967295, %s1538_s18   ;;  %p40_p0 = scmp.ne.s32.totalorder %s1530_s16, %s1526_s15  ;;  %s1538_s18 = sphi %s1579_s18, %s2263_s18   ;;  %s1534_s17 = sphi %s1577_s17, %s2262_s17   ;;  %s1530_s16 = sphi %s1575_s16, %s2261_s16   ;;  %s1526_s15 = sphi %s1573_s15, %s2260_s15  }
   0x6   : > { %p2248_p1 = scmp.eq.s32.totalorder %s1592_s19, 0  ;;  %p1035_p2 = scmp.ge.s32.totalorder %s1538_s18, 1 }
   0x7   : > { %p145_p3 = scmp.lt.s32.totalorder %s1538_s18, 3  ;;  %s1540_s22 = smov [#allocation6]  }
   0x8   : > { %p1600_p4 = por %p2248_p1, %p40_p0  ;;  %s157_s23 = sshll.u32 %s1540_s22, 4  ;;  %s158_s23 = int_to_ptr.vmem [resolvable:$true] %s157_s23 }
   0x9   : > { %p1604_p5 = pnand %p1035_p2, %p145_p3  ;;  %s1617_s25 = sadd.s32 1, %s1538_s18  }
   0xa   : > { %s2251_s20 = scalar_select %p1600_p4, 1, 0 }
   0xb   : > { %s2252_s21 = scalar_select %p1604_p5, 1, 0 }
   0xc   : > { %p1242_p6 = pneg %p1604_p5  ;;  %s27_s26 = sadd.s32 1, %s1534_s17 }
   0xd   : > { %s24_s27 = ssub.s32 %s1538_s18, %s1617_s25  ;;  %s1408_s30 = scalar_lea.hbm %s2245_s2, 2048 }
   0xe   : > { %p1612_p7 = pnand %p1242_p6, %p2248_p1  ;;  %p1409_p8 = scmp.ne.s32.totalorder %s2245_s2, %s1408_s30 }
   0xf   : > { %p1415_p12 = scmp.lt.u32.totalorder %s1408_s30, %s2245_s2 }
  0x10   : > { %p1410_p9 = pneg %p1612_p7 }
  0x12   : > { %p1411_p10 = pnand %p1410_p9, %p1409_p8 }
  0x14   : > { %p1412_p11 = pneg %p1411_p10 }
  0x16   : > { %p1417_p13 = pnand %p1415_p12, %p1412_p11 }
  0x18   : > { %1420 = shalt.err (!%p1417_p13)
}
  0x19   : > { %s1421_s9 = scalar_lea.vmem %s158_s23, 2048  ;;  %p1429_p6 = scmp.lt.s32.totalorder %s158_s23, %s158_s23 }
  0x1a   : > { %p1422_p0 = scmp.ne.s32.totalorder %s158_s23, %s1421_s9  ;;  %p1430_p1 = scmp.lt.s32.totalorder %s1421_s9, %s1421_s9 }
  0x1c   : > { %p1424_p2 = pnand %p1422_p0, %p1410_p9  ;;  %p1431_p4 = por %p1430_p1, %p1429_p6 }
  0x1e   : > { %p1425_p3 = pneg %p1424_p2 }
  0x20   : > { %p1432_p5 = pnand %p1431_p4, %p1425_p3 }
  0x22   : > { %1435 = shalt.err (!%p1432_p5)
}
  0x23   : > { %s1541_s10 = smov 128   ;;  %s1542_s11 = smov 8  }
  0x24   : > { %1245 = dma.hbm_to_vmem [thread:$0]  (!%p1612_p7), %s2245_s2, 2048, %s158_s23, [#allocation5], %s1541_s10, %s1541_s10, %s1542_s11  }
  0x25   : > { %p25_p1 = scmp.eq.s32.totalorder %s24_s27, 0  ;;  %p34_p4 = scmp.ne.s32.totalorder %s1534_s17, %s1530_s16 }
  0x26   : > { %p35_p5 = scmp.eq.s32.totalorder %s1538_s18, 0  ;;  %p1254_p8 = scmp.lt.s32.totalorder %s1538_s18, 2 }
  0x27   : > { %s1646_s14 = scalar_select %p25_p1, %s1534_s17, %s27_s26  }
  0x28   : > { %p36_p9 = por %p35_p5, %p34_p4  ;;  %s174_s15 = sand.u32 1, %s1534_s17  }
  0x29   : > { %s1649_s22 = smul.u32 152, %s174_s15  ;;  %s195_s29 = sand.u32 1, %s1538_s18  }
  0x2a   : > { %s1065_s28 = smul.u32 2432, %s1538_s18  ;;  %p1652_p10 = pnand %p1254_p8, %p36_p9 }
  0x2b   : > { %s178_s26 = scalar_lea.vmem [#allocation2], %s1649_s22  ;;  %s1667_s6 = scalar_lea.sflag [#allocation3], %s174_s15 }
  0x2c   : > { %s1662_s30 = scalar_lea.hbm %s2243_s0, %s1065_s28  ;;  %s185_s5 = sshll.u32 %s178_s26, 4  ;;  %s1665_s5 = int_to_ptr.vmem [resolvable:$true] %s185_s5 }
  0x2d   : > { %s1436_s7 = scalar_lea.hbm %s1662_s30, 2432  ;;  %p1438_p11 = pneg %p1652_p10 }
  0x2e   : > { %p1437_p7 = scmp.ne.s32.totalorder %s1662_s30, %s1436_s7  ;;  %s1441_s12 = scalar_lea.hbm %s2243_s0, 4864 }
  0x2f   : > { %p1442_p0 = scmp.lt.u32.totalorder %s1662_s30, %s2243_s0  ;;  %p1443_p2 = scmp.lt.u32.totalorder %s1441_s12, %s1436_s7 }
  0x30   : > { %p1439_p12 = pnand %p1438_p11, %p1437_p7  ;;  %p1445_p6 = scmp.lt.u32.totalorder %s1436_s7, %s1662_s30 }
  0x31   : > { %p1444_p3 = por %p1443_p2, %p1442_p0 }
  0x32   : > { %p1440_p13 = pneg %p1439_p12 }
  0x33   : > { %p1446_p1 = por %p1445_p6, %p1444_p3 }
  0x35   : > { %p1447_p4 = pnand %p1446_p1, %p1440_p13 }
  0x37   : > { %1450 = shalt.err (!%p1447_p4)
}
  0x38   : > { %s1451_s15 = scalar_lea.vmem %s1665_s5, 2432  ;;  %s1543_s27 = smov [#allocation2]  }
  0x39   : > { %p1452_p5 = scmp.ne.s32.totalorder %s1665_s5, %s1451_s15  ;;  %s1456_s26 = sshll.u32 %s1543_s27, 4  ;;  %s1457_s26 = int_to_ptr.vmem [resolvable:$false] %s1456_s26 }
  0x3a   : > { %s1458_s8 = scalar_lea.vmem %s1457_s26, 4864  ;;  %p1459_p7 = scmp.lt.s32.totalorder %s1665_s5, %s1457_s26 }
  0x3b   : > { %p1454_p8 = pnand %p1452_p5, %p1438_p11  ;;  %p1460_p12 = scmp.lt.s32.totalorder %s1458_s8, %s1451_s15 }
  0x3d   : > { %p1455_p9 = pneg %p1454_p8  ;;  %p1461_p0 = por %p1460_p12, %p1459_p7 }
  0x3f   : > { %p1462_p2 = pnand %p1461_p0, %p1455_p9 }
  0x41   : > { %1465 = shalt.err (!%p1462_p2)
}
  0x42   : > { %1249 = dma.hbm_to_vmem [thread:$0]  (!%p1652_p10), %s1662_s30, 2432, %s1665_s5, %s1667_s6, %s1541_s10, %s1541_s10, %s1542_s11  }
  0x43   : > { %s1703_s12 = scalar_lea.hbm %s2244_s1, %s1065_s28  ;;  %s199_s13 = scalar_lea.vmem [#allocation4], %s1649_s22 }
  0x44   : > { %s206_s23 = sshll.u32 %s199_s13, 4  ;;  %s1710_s15 = scalar_lea.sflag [#allocation5], %s195_s29  ;;  %s1706_s23 = int_to_ptr.vmem [resolvable:$true] %s206_s23 }
  0x45   : > { %s1466_s27 = scalar_lea.hbm %s1703_s12, 2432  ;;  %s1471_s5 = scalar_lea.hbm %s2244_s1, 4864 }
  0x46   : > { %p1467_p13 = scmp.ne.s32.totalorder %s1703_s12, %s1466_s27  ;;  %p1472_p1 = scmp.lt.u32.totalorder %s1703_s12, %s2244_s1 }
  0x47   : > { %p1473_p4 = scmp.lt.u32.totalorder %s1471_s5, %s1466_s27  ;;  %p1475_p8 = scmp.lt.u32.totalorder %s1466_s27, %s1703_s12 }
  0x48   : > { %p1469_p3 = pnand %p1467_p13, %p1438_p11 }
  0x49   : > { %p1474_p5 = por %p1473_p4, %p1472_p1 }
  0x4a   : > { %p1470_p6 = pneg %p1469_p3 }
  0x4b   : > { %p1476_p9 = por %p1475_p8, %p1474_p5 }
  0x4d   : > { %p1477_p7 = pnand %p1476_p9, %p1470_p6 }
  0x4f   : > { %1480 = shalt.err (!%p1477_p7)
}
  0x50   : > { %s1481_s18 = scalar_lea.vmem %s1706_s23, 2432  ;;  %s1544_s22 = smov [#allocation4]  }
  0x51   : > { %p1482_p12 = scmp.ne.s32.totalorder %s1706_s23, %s1481_s18  ;;  %s1486_s29 = sshll.u32 %s1544_s22, 4  ;;  %s1487_s29 = int_to_ptr.vmem [resolvable:$false] %s1486_s29 }
  0x52   : > { %s1488_s8 = scalar_lea.vmem %s1487_s29, 4864  ;;  %p1489_p13 = scmp.lt.s32.totalorder %s1706_s23, %s1487_s29 }
  0x53   : > { %p1484_p0 = pnand %p1482_p12, %p1438_p11  ;;  %p1490_p3 = scmp.lt.s32.totalorder %s1488_s8, %s1481_s18 }
  0x55   : > { %p1485_p2 = pneg %p1484_p0  ;;  %p1491_p1 = por %p1490_p3, %p1489_p13 }
  0x57   : > { %p1492_p4 = pnand %p1491_p1, %p1485_p2 }
  0x59   : > { %1495 = shalt.err (!%p1492_p4)
}
  0x5a   : > { %1252 = dma.hbm_to_vmem [thread:$0]  (!%p1652_p10), %s1703_s12, 2432, %s1706_s23, %s1710_s15, %s1541_s10, %s1541_s10, %s1542_s11  }
  0x5b   : > { %p2255_p11 = scmp.ne.s32.totalorder %s2252_s21, 0 }
  0x5c   : > { %s220_s7 = sand.u32 (!%p2255_p11), 1, %s1530_s16   ;;  %p2256_p6 = scmp.ne.s32.totalorder (!%p2255_p11), %s2251_s20, 0 }
  0x5d   : > { %218 = sbr.rel (%p2255_p11) target bundleno = 468 (0x1d4), region = 36  ;;  %s221_s13 = scalar_lea.sflag (!%p2255_p11), [#allocation3], %s220_s7 }
  0x5e   : > { %s1233_s9 = smul.u32 (!%p2255_p11), 152, %s220_s7 }
  0x60   : > { %s1742_s27 = scalar_lea.vmem (!%p2255_p11), [#allocation2], %s1233_s9 }
  0x64   : > { %1513 = dma.done.wait (%p2256_p6), %s221_s13, 2432  }
  0x65   : > { %1515 = vsyncadd (%p2256_p6), %s221_s13, 4294964864  ;;  %s229_s24 = sand.u32 1, %s1592_s19   ;;  %s1749_s10 = scalar_lea.vmem [#allocation4], %s1233_s9 }
  0x66   : > { %s230_s30 = scalar_lea.sflag [#allocation5], %s229_s24 }
  0x67   : > { %1517 = dma.done.wait (%p2256_p6), %s230_s30, 2432  }
  0x68   : > { %1519 = vsyncadd (%p2256_p6), %s230_s30, 4294964864  ;;  %p2257_p10 = scmp.eq.s32.totalorder %s1592_s19, 0 }
  0x6a   : > { %1521 = dma.done.wait (%p2257_p10), [#allocation5], 2048   ;;  %p2258_p5 = pmov %p2257_p10 }
  0x6b   : > { %v1545_v0 = vmov 0.0|0.0   ;;  %vm1546_vm0 = vmmov 0   ;;  %v1547_v1 = vmov 0.0   ;;  %v389_v2 = vld [vmem:[#allocation6] sm:$0xff]  ;;  %v390_v3 = vld [vmem:[#allocation6 + $0x8] sm:$0xff]  ;;  %v391_v4 = vld [vmem:[#allocation6 + $0x10] sm:$0xff] }
  0x6c   : > { %1523 = vsyncadd (%p2258_p5), [#allocation5], 4294965248  ;;  %1191 = vmatprep.subr.bf16.mxu0 %v1545_v0  ;;  %1215 = vmatprep.subr.bf16.mxu1 %v1545_v0  ;;  %v1192_v5 = vpack.c.bf16 %v390_v3, %v389_v2  ;;  %v392_v6 = vld [vmem:[#allocation6 + $0x18] sm:$0xff]  ;;  %v393_v8 = vld [vmem:[#allocation6 + $0x20] sm:$0xff]  ;;  %s269_s11 = smul.u32 19, %s1592_s19 }
  0x6d   : > { %1134 = vmatprep.mubr.msk.f32.mxu0 %vm1546_vm0, %v1547_v1  ;;  %1164 = vmatprep.mubr.msk.f32.mxu1 %vm1546_vm0, %v1547_v1  ;;  %v1195_v7 = vpack.c.bf16 %v392_v6, %v391_v4  ;;  %v394_v9 = vld [vmem:[#allocation6 + $0x28] sm:$0xff]  ;;  %v275_v10 = vld [vmem:[%s1742_s27] sm:$0xff]  ;;  %v395_v15 = vld [vmem:[#allocation6 + $0x30] sm:$0xff] }
  0x6e   : > { %1193 = vmatpush3.bf16.msra.mxu0 %v1192_v5  ;;  %1223 = vmatpush3.bf16.msra.mxu1 %v1192_v5  ;;  %v294_v11 = vld [vmem:[%s1749_s10] sm:$0xff]  ;;  %v276_v13 = vld [vmem:[%s1742_s27 + $0x8] sm:$0xff]  ;;  %v1198_v14 = vpack.c.bf16 %v394_v9, %v393_v8  ;;  %v295_v16 = vld [vmem:[%s1749_s10 + $0x8] sm:$0xff]  ;;  %p2043_p8 = scmp.lt.s32.totalorder %s269_s11, 37 }
  0x6f   : > { %1194 = vmatprep.subr.bf16.mxu0 %v1545_v0  ;;  %1216 = vmatprep.subr.bf16.mxu1 %v1545_v0  ;;  %v1769_v12 = vsub.f32 %v275_v10, %v294_v11  ;;  %v396_v17 = vld [vmem:[#allocation6 + $0x38] sm:$0xff]  ;;  %v1775_v18 = vsub.f32 %v276_v13, %v295_v16  ;;  %v277_v19 = vld [vmem:[%s1742_s27 + $0x10] sm:$0xff]  ;;  %v297_v24 = vld [vmem:[%s1749_s10 + $0x18] sm:$0xff] }
  0x70   : > { %v296_v20 = vld [vmem:[%s1749_s10 + $0x10] sm:$0xff]  ;;  %v278_v23 = vld [vmem:[%s1742_s27 + $0x18] sm:$0xff]  ;;  %v1201_v27 = vpack.c.bf16 %v396_v17, %v395_v15  ;;  %v298_v30 = vld [vmem:[%s1749_s10 + $0x20] sm:$0xff]  ;;  %s2265_s11 = smov (!%p2043_p8, %s269_s11), 37 }
  0x71   : > { %v332_v21 = vmul.f32 %v1769_v12, %v1769_v12  ;;  %v1781_v22 = vsub.f32 %v277_v19, %v296_v20  ;;  %v279_v25 = vld [vmem:[%s1742_s27 + $0x20] sm:$0xff]  ;;  %v333_v26 = vmul.f32 %v1775_v18, %v1775_v18  ;;  %v1788_v29 = vsub.f32 %v278_v23, %v297_v24  ;;  %v398_v32 = vld [vmem:[#allocation6 + $0x48] sm:$0xff]  ;;  %v299_v35 = vld [vmem:[%s1749_s10 + $0x28] sm:$0xff]  ;;  %s1042_s19 = sshll.u32 %s2265_s11, 3 }
  0x72   : > { %1196 = vmatpush3.bf16.msra.mxu0 %v1195_v7  ;;  %1224 = vmatpush3.bf16.msra.mxu1 %v1195_v7  ;;  %v397_v28 = vld [vmem:[#allocation6 + $0x40] sm:$0xff]  ;;  %v1795_v33 = vsub.f32 %v279_v25, %v298_v30  ;;  %v281_v36 = vld [vmem:[%s1742_s27 + $0x30] sm:$0xff]  ;;  %v400_v43 = vld [vmem:[#allocation6 + $0x58] sm:$0xff]  ;;  %s2093_s28 = scalar_lea.vmem %s2247_s4, %s1042_s19 }
  0x73   : > { %1197 = vmatprep.subr.bf16.mxu0 %v1545_v0  ;;  %1217 = vmatprep.subr.bf16.mxu1 %v1545_v0  ;;  %v334_v31 = vmul.f32 %v1781_v22, %v1781_v22  ;;  %v280_v34 = vld [vmem:[%s1742_s27 + $0x28] sm:$0xff]  ;;  %v300_v37 = vld [vmem:[%s1749_s10 + $0x30] sm:$0xff]  ;;  %v335_v38 = vmul.f32 %v1788_v29, %v1788_v29  ;;  %v1204_v40 = vpack.c.bf16 %v398_v32, %v397_v28  ;;  %v399_v41 = vld [vmem:[#allocation6 + $0x50] sm:$0xff] }
  0x74   : > { %351 = vadd.xlane.f32.xlu0 %v332_v21  ;;  %v336_v39 = vmul.f32 %v1795_v33, %v1795_v33  ;;  %v1805_v42 = vsub.f32 %v280_v34, %v299_v35  ;;  %v1809_v44 = vsub.f32 %v281_v36, %v300_v37  ;;  %v282_v45 = vld [vmem:[%s1742_s27 + $0x38] sm:$0xff]  ;;  %v301_v46 = vld [vmem:[%s1749_s10 + $0x38] sm:$0xff]  ;;  %v283_v47 = vld [vmem:[%s1742_s27 + $0x40] sm:$0xff]  ;;  %v1207_v51 = vpack.c.bf16 %v400_v43, %v399_v41 }
  0x75   : > { %355 = vadd.xlane.f32.xlu1 %v334_v31  ;;  %v302_v48 = vld [vmem:[%s1749_s10 + $0x40] sm:$0xff]  ;;  %v401_v52 = vld [vmem:[#allocation6 + $0x60] sm:$0xff]  ;;  %v1819_v53 = vsub.f32 %v282_v45, %v301_v46  ;;  %v303_v57 = vld [vmem:[%s1749_s10 + $0x48] sm:$0xff] }
  0x76   : > { %1199 = vmatpush3.bf16.msra.mxu0 %v1198_v14  ;;  %1225 = vmatpush3.bf16.msra.mxu1 %v1198_v14  ;;  %v337_v49 = vmul.f32 %v1805_v42, %v1805_v42  ;;  %v338_v50 = vmul.f32 %v1809_v44, %v1809_v44  ;;  %v402_v54 = vld [vmem:[#allocation6 + $0x68] sm:$0xff]  ;;  %v1823_v55 = vsub.f32 %v283_v47, %v302_v48  ;;  %v304_v59 = vld [vmem:[%s1749_s10 + $0x50] sm:$0xff]  ;;  %v403_v63 = vld [vmem:[#allocation6 + $0x70] sm:$0xff] }
  0x77   : > { %1200 = vmatprep.subr.bf16.mxu0 %v1545_v0  ;;  %1218 = vmatprep.subr.bf16.mxu1 %v1545_v0  ;;  %v284_v56 = vld [vmem:[%s1742_s27 + $0x48] sm:$0xff]  ;;  %v285_v58 = vld [vmem:[%s1742_s27 + $0x50] sm:$0xff]  ;;  %v339_v60 = vmul.f32 %v1819_v53, %v1819_v53  ;;  %v1210_v62 = vpack.c.bf16 %v402_v54, %v401_v52  ;;  %v404_v3 = vld [vmem:[#allocation6 + $0x78] sm:$0xff] }
  0x78   : > { %353 = vadd.xlane.f32.xlu0 %v333_v26  ;;  %v340_v61 = vmul.f32 %v1823_v55, %v1823_v55  ;;  %v1833_v2 = vsub.f32 %v284_v56, %v303_v57  ;;  %v323_v4 = vsub.f32 %v285_v58, %v304_v59  ;;  %v286_v5 = vld [vmem:[%s1742_s27 + $0x58] sm:$0xff]  ;;  %v305_v6 = vld [vmem:[%s1749_s10 + $0x58] sm:$0xff]  ;;  %v1213_v9 = vpack.c.bf16 %v404_v3, %v403_v63  ;;  %v287_v11 = vld [vmem:[%s1742_s27 + $0x60] sm:$0xff] }
  0x79   : > { %357 = vadd.xlane.f32.xlu1 %v335_v38  ;;  %v324_v10 = vsub.f32 %v286_v5, %v305_v6  ;;  %v306_v13 = vld [vmem:[%s1749_s10 + $0x60] sm:$0xff]  ;;  %v288_v14 = vld [vmem:[%s1742_s27 + $0x68] sm:$0xff]  ;;  %v307_v15 = vld [vmem:[%s1749_s10 + $0x68] sm:$0xff] }
  0x7a   : > { %1202 = vmatpush3.bf16.msra.mxu0 %v1201_v27  ;;  %1226 = vmatpush3.bf16.msra.mxu1 %v1201_v27  ;;  %v341_v7 = vmul.f32 %v1833_v2, %v1833_v2  ;;  %v342_v8 = vmul.f32 %v323_v4, %v323_v4  ;;  %v325_v17 = vsub.f32 %v287_v11, %v306_v13  ;;  %v289_v20 = vld [vmem:[%s1742_s27 + $0x70] sm:$0xff]  ;;  %v308_v21 = vld [vmem:[%s1749_s10 + $0x70] sm:$0xff]  ;;  %v290_v23 = vld [vmem:[%s1742_s27 + $0x78] sm:$0xff] }
  0x7b   : > { %1203 = vmatprep.subr.bf16.mxu0 %v1545_v0  ;;  %1219 = vmatprep.subr.bf16.mxu1 %v1545_v0  ;;  %v343_v16 = vmul.f32 %v324_v10, %v324_v10  ;;  %v326_v19 = vsub.f32 %v288_v14, %v307_v15  ;;  %v309_v24 = vld [vmem:[%s1749_s10 + $0x78] sm:$0xff]  ;;  %v327_v26 = vsub.f32 %v289_v20, %v308_v21  ;;  %v291_v28 = vld [vmem:[%s1742_s27 + $0x80] sm:$0xff]  ;;  %v310_v30 = vld [vmem:[%s1749_s10 + $0x80] sm:$0xff] }
  0x7c   : > { %359 = vadd.xlane.f32.xlu0 %v336_v39  ;;  %v344_v25 = vmul.f32 %v325_v17, %v325_v17  ;;  %v328_v27 = vsub.f32 %v290_v23, %v309_v24  ;;  %v292_v31 = vld [vmem:[%s1742_s27 + $0x88] sm:$0xff]  ;;  %v311_v32 = vld [vmem:[%s1749_s10 + $0x88] sm:$0xff]  ;;  %v293_v37 = vld [vmem:[%s1742_s27 + $0x90] sm:$0xff] }
  0x7d   : > { %361 = vadd.xlane.f32.xlu1 %v337_v49  ;;  %v346_v34 = vmul.f32 %v327_v26, %v327_v26  ;;  %v330_v36 = vsub.f32 %v292_v31, %v311_v32  ;;  %v312_v38 = vld [vmem:[%s1749_s10 + $0x90] sm:$0xff] }
  0x7e   : > { %1205 = vmatpush3.bf16.msra.mxu0 %v1204_v40  ;;  %1227 = vmatpush3.bf16.msra.mxu1 %v1204_v40  ;;  %v347_v35 = vmul.f32 %v328_v27, %v328_v27  ;;  %v331_v41 = vsub.f32 %v293_v37, %v312_v38 }
  0x7f   : > { %1206 = vmatprep.subr.bf16.mxu0 %v1545_v0  ;;  %1220 = vmatprep.subr.bf16.mxu1 %v1545_v0  ;;  %v349_v40 = vmul.f32 %v330_v36, %v330_v36 }
  0x80   : > { %363 = vadd.xlane.f32.xlu0 %v338_v50 }
  0x81   : > { %365 = vadd.xlane.f32.xlu1 %v339_v60 }
  0x82   : > { %1208 = vmatpush3.bf16.msra.mxu0 %v1207_v51  ;;  %1228 = vmatpush3.bf16.msra.mxu1 %v1207_v51 }
  0x83   : > { %1209 = vmatprep.subr.bf16.mxu0 %v1545_v0  ;;  %1221 = vmatprep.subr.bf16.mxu1 %v1545_v0 }
  0x84   : > { %367 = vadd.xlane.f32.xlu0 %v340_v61 }
  0x85   : > { %369 = vadd.xlane.f32.xlu1 %v341_v7 }
  0x86   : > { %1211 = vmatpush3.bf16.msra.mxu0 %v1210_v62  ;;  %1229 = vmatpush3.bf16.msra.mxu1 %v1210_v62 }
  0x87   : > { %1212 = vmatprep.subr.bf16.mxu0 %v1545_v0  ;;  %1222 = vmatprep.subr.bf16.mxu1 %v1545_v0  ;;  %v345_v0 = vmul.f32 %v326_v19, %v326_v19 }
  0x88   : > { %371 = vadd.xlane.f32.xlu0 %v342_v8 }
  0x89   : > { %373 = vadd.xlane.f32.xlu1 %v343_v16 }
  0x8a   : > { %1214 = vmatpush3.bf16.msra.mxu0 %v1213_v9  ;;  %1230 = vmatpush3.bf16.msra.mxu1 %v1213_v9 }
  0x8c   : > { %375 = vadd.xlane.f32.xlu0 %v344_v25 }
  0x8d   : > { %1135 = vmatmul.mubr.f32.vlgmr.msra.gmra.mrb[0].mxu0 %v1769_v12  ;;  %1165 = vmatmul.mubr.f32.vlgmr.msra.gmra.mrb[0].mxu1 %v323_v4  ;;  %v329_v12 = vsub.f32 %v291_v28, %v310_v30 }
  0x8e   : > { %1137 = vmatprep.mubr.msk.f32.mxu0 %vm1546_vm0, %v1547_v1  ;;  %1167 = vmatprep.mubr.msk.f32.mxu1 %vm1546_vm0, %v1547_v1 }
  0x8f   : > { %377 = vadd.xlane.f32.xlu1 %v345_v0  ;;  %v348_v39 = vmul.f32 %v329_v12, %v329_v12 }
  0x90   : > { %379 = vadd.xlane.f32.xlu0 %v346_v34 }
  0x91   : > { %1138 = vmatmul.mubr.f32.gmra.mrb[2].mxu0 %v1775_v18  ;;  %1168 = vmatmul.mubr.f32.gmra.mrb[2].mxu1 %v324_v10  ;;  %v350_v18 = vmul.f32 %v331_v41, %v331_v41 }
  0x92   : > { %1140 = vmatprep.mubr.msk.f32.mxu0 %vm1546_vm0, %v1547_v1  ;;  %1170 = vmatprep.mubr.msk.f32.mxu1 %vm1546_vm0, %v1547_v1 }
  0x93   : > { %381 = vadd.xlane.f32.xlu1 %v347_v35 }
  0x94   : > { %383 = vadd.xlane.f32.xlu0 %v348_v39 }
  0x95   : > { %1141 = vmatmul.mubr.f32.gmra.mrb[4].mxu0 %v1781_v22  ;;  %1171 = vmatmul.mubr.f32.gmra.mrb[4].mxu1 %v325_v17 }
  0x96   : > { %1143 = vmatprep.mubr.msk.f32.mxu0 %vm1546_vm0, %v1547_v1  ;;  %1173 = vmatprep.mubr.msk.f32.mxu1 %vm1546_vm0, %v1547_v1 }
  0x97   : > { %385 = vadd.xlane.f32.xlu1 %v349_v40 }
  0x98   : > { %387 = vadd.xlane.f32.xlu0 %v350_v18 }
  0x99   : > { %1144 = vmatmul.mubr.f32.gmra.mrb[6].mxu0 %v1788_v29  ;;  %1174 = vmatmul.mubr.f32.gmra.mrb[6].mxu1 %v326_v19 }
  0x9a   : > { %1146 = vmatprep.mubr.msk.f32.mxu0 %vm1546_vm0, %v1547_v1  ;;  %1176 = vmatprep.mubr.msk.f32.mxu1 %vm1546_vm0, %v1547_v1 }
  0x9d   : > { %1147 = vmatmul.mubr.f32.gmra.mrb[8].mxu0 %v1795_v33  ;;  %1177 = vmatmul.mubr.f32.gmra.mrb[8].mxu1 %v327_v26 }
  0x9e   : > { %1149 = vmatprep.mubr.msk.f32.mxu0 %vm1546_vm0, %v1547_v1  ;;  %1179 = vmatprep.mubr.msk.f32.mxu1 %vm1546_vm0, %v1547_v1 }
  0xa1   : > { %1150 = vmatmul.mubr.f32.gmra.mrb[10].mxu0 %v1805_v42  ;;  %1180 = vmatmul.mubr.f32.gmra.mrb[10].mxu1 %v328_v27 }
  0xa2   : > { %1152 = vmatprep.mubr.msk.f32.mxu0 %vm1546_vm0, %v1547_v1  ;;  %1182 = vmatprep.mubr.msk.f32.mxu1 %vm1546_vm0, %v1547_v1 }
  0xa5   : > { %1153 = vmatmul.mubr.f32.gmra.mrb[12].mxu0 %v1809_v44  ;;  %1183 = vmatmul.mubr.f32.gmra.mrb[12].mxu1 %v329_v12 }
  0xa6   : > { %1155 = vmatprep.mubr.msk.f32.mxu0 %vm1546_vm0, %v1547_v1  ;;  %1185 = vmatprep.mubr.msk.f32.mxu1 %vm1546_vm0, %v1547_v1 }
  0xa9   : > { %1156 = vmatmul.mubr.f32.gmra.mrb[14].mxu0 %v1819_v53  ;;  %1186 = vmatmul.mubr.f32.gmra.mrb[14].mxu1 %v330_v36 }
  0xaa   : > { %1158 = vmatprep.mubr.msk.f32.mxu0 %vm1546_vm0, %v1547_v1  ;;  %1188 = vmatprep.mubr.msk.f32.mxu1 %vm1546_vm0, %v1547_v1 }
  0xad   : > { %1159 = vmatmul.mubr.f32.gmra.mrb[16].mxu0 %v1823_v55  ;;  %1189 = vmatmul.mubr.f32.gmra.mrb[16].mxu1 %v331_v41  ;;  %v1916_v55 = vld [vmem:[%s2246_s3] ss:$0 sm:$0xff] }
  0xae   : > { %1161 = vmatprep.mubr.msk.f32.mxu0 %vm1546_vm0, %v1547_v1 }
  0xb1   : > { %1162 = vmatmul.mubr.f32.gmra.mrb[18].mxu0 %v1833_v2 }
 0x101   : > { %v352_v22 = vpop.xlane.xlu0 %351 }
 0x102   : > { %v356_v29 = vpop.xlane.xlu1 %355 }
 0x105   : > { %v354_v33 = vpop.xlane.xlu0 %353 }
 0x106   : > { %v358_v42 = vpop.xlane.xlu1 %357 }
 0x109   : > { %v1901_v43 = vpop.xlane.xlu0 %359 }
 0x10a   : > { %v1903_v44 = vpop.xlane.xlu1 %361 }
 0x10d   : > { %v1905_v45 = vpop.xlane.xlu0 %363 }
 0x10e   : > { %v1907_v46 = vpop.xlane.xlu1 %365 }
 0x111   : > { %v1909_v47 = vpop.xlane.xlu0 %367 }
 0x112   : > { %v1911_v48 = vpop.xlane.xlu1 %369 }
 0x115   : > { %v372_v49 = vpop.xlane.xlu0 %371 }
 0x116   : > { %v374_v58 = vpop.xlane.xlu1 %373 }
 0x119   : > { %v376_v14 = vpop.xlane.xlu0 %375 }
 0x11c   : > { %v378_v31 = vpop.xlane.xlu1 %377 }
 0x160   : > { %v471_v1 = vpop.f32.mrb[0].mxu0  ;;  %v521_v50 = vpop.f32.mrb[0].mxu1 }
 0x161   : > { %v565_v51 = vmul.f32 2.0, %v471_v1  ;;  %v575_v52 = vmul.f32 2.0, %v521_v50  ;;  %v1136_v53 = vpop.f32.mrb[1].mxu0  ;;  %v1166_v54 = vpop.f32.mrb[1].mxu1 }
 0x163   : > { %v584_v56 = vadd.f32 %v565_v51, %v352_v22  ;;  %v594_v57 = vadd.f32 %v575_v52, %v372_v49  ;;  %v380_v49 = vpop.xlane.xlu0 %379 }
 0x164   : > { %v476_v59 = vpop.f32.mrb[2].mxu0  ;;  %v526_v60 = vpop.f32.mrb[2].mxu1 }
 0x165   : > { %v610_v61 = vadd.f32 %v1916_v55, %v584_v56  ;;  %v620_v62 = vadd.f32 %v1916_v55, %v594_v57  ;;  %v566_v63 = vmul.f32 2.0, %v476_v59  ;;  %v576_v2 = vmul.f32 2.0, %v526_v60  ;;  %v1139_v3 = vpop.f32.mrb[3].mxu0  ;;  %v1169_v4 = vpop.f32.mrb[3].mxu1 }
 0x167   : > { %v1920_v5 = vmax.f32 %v610_v61, 0.0  ;;  %v1922_v6 = vmax.f32 %v620_v62, 0.0  ;;  %v585_v7 = vadd.f32 %v566_v63, %v354_v33  ;;  %v595_v8 = vadd.f32 %v576_v2, %v374_v58 }
 0x168   : > { %v481_v9 = vpop.f32.mrb[4].mxu0  ;;  %v531_v10 = vpop.f32.mrb[4].mxu1 }
 0x169   : > { %1294 = vrsqrt.f32 %v1920_v5  ;;  %v1142_v11 = vpop.f32.mrb[5].mxu0  ;;  %v1172_v13 = vpop.f32.mrb[5].mxu1  ;;  %v611_v15 = vadd.f32 %v1916_v55, %v585_v7  ;;  %v621_v16 = vadd.f32 %v1916_v55, %v595_v8  ;;  %v567_v17 = vmul.f32 2.0, %v481_v9 }
 0x16a   : > { %1296 = vrsqrt.f32 %v1922_v6  ;;  %v577_v19 = vmul.f32 2.0, %v531_v10  ;;  %vm650_vm1 = vcmp.eq.f32.partialorder %v1920_v5, inf  ;;  %vm652_vm2 = vcmp.eq.f32.partialorder %v1920_v5, 0.0 }
 0x16b   : > { %v1928_v23 = vmax.f32 %v611_v15, 0.0  ;;  %v1930_v24 = vmax.f32 %v621_v16, 0.0  ;;  %v586_v25 = vadd.f32 %v567_v17, %v356_v29  ;;  %v653_v40 = vand.u32 2147483648, %v1920_v5 }
 0x16c   : > { %v486_v20 = vpop.f32.mrb[6].mxu0  ;;  %v536_v21 = vpop.f32.mrb[6].mxu1  ;;  %v596_v0 = vadd.f32 %v577_v19, %v376_v14  ;;  %vm720_vm3 = vcmp.eq.f32.partialorder %v1922_v6, inf  ;;  %vm722_vm4 = vcmp.eq.f32.partialorder %v1922_v6, 0.0  ;;  %v723_v50 = vand.u32 2147483648, %v1922_v6 }
 0x16d   : > { %v1145_v26 = vpop.f32.mrb[7].mxu0  ;;  %v1175_v27 = vpop.f32.mrb[7].mxu1  ;;  %v568_v28 = vmul.f32 2.0, %v486_v20  ;;  %v578_v30 = vmul.f32 2.0, %v536_v21  ;;  %1298 = vrsqrt.f32 %v1928_v23  ;;  %v612_v35 = vadd.f32 %v1916_v55, %v586_v25 }
 0x16e   : > { %1300 = vrsqrt.f32 %v1930_v24  ;;  %v622_v12 = vadd.f32 %v1916_v55, %v596_v0  ;;  %vm657_vm5 = vcmp.eq.f32.partialorder %v1928_v23, inf  ;;  %vm659_vm6 = vcmp.eq.f32.partialorder %v1928_v23, 0.0 }
 0x16f   : > { %v587_v36 = vadd.f32 %v568_v28, %v358_v42  ;;  %v597_v37 = vadd.f32 %v578_v30, %v378_v31  ;;  %v1941_v22 = vmax.f32 %v612_v35, 0.0  ;;  %v660_v60 = vand.u32 2147483648, %v1928_v23 }
 0x170   : > { %v491_v32 = vpop.f32.mrb[8].mxu0  ;;  %v541_v34 = vpop.f32.mrb[8].mxu1  ;;  %v1943_v29 = vmax.f32 %v622_v12, 0.0  ;;  %vm727_vm7 = vcmp.eq.f32.partialorder %v1930_v24, inf  ;;  %vm729_vm8 = vcmp.eq.f32.partialorder %v1930_v24, 0.0  ;;  %v730_v10 = vand.u32 2147483648, %v1930_v24 }
 0x171   : > { %v1148_v38 = vpop.f32.mrb[9].mxu0  ;;  %v1178_v39 = vpop.f32.mrb[9].mxu1  ;;  %v569_v41 = vmul.f32 2.0, %v491_v32  ;;  %v579_v33 = vmul.f32 2.0, %v541_v34  ;;  %v613_v51 = vadd.f32 %v1916_v55, %v587_v36  ;;  %1302 = vrsqrt.f32 %v1941_v22 }
 0x172   : > { %v623_v56 = vadd.f32 %v1916_v55, %v597_v37  ;;  %1304 = vrsqrt.f32 %v1943_v29  ;;  %vm664_vm9 = vcmp.eq.f32.partialorder %v1941_v22, inf  ;;  %vm666_vm10 = vcmp.eq.f32.partialorder %v1941_v22, 0.0 }
 0x173   : > { %v1295_v18 = vpop.eup %1294  ;;  %v588_v61 = vadd.f32 %v569_v41, %v1901_v43  ;;  %v598_v2 = vadd.f32 %v579_v33, %v380_v49  ;;  %v1970_v7 = vmax.f32 %v613_v51, 0.0  ;;  %v667_v21 = vand.u32 2147483648, %v1941_v22 }
 0x174   : > { %v1297_v42 = vpop.eup %1296  ;;  %v649_v1 = vmul.f32 %v1295_v18, %v1920_v5  ;;  %v496_v52 = vpop.f32.mrb[10].mxu0  ;;  %v1978_v11 = vmax.f32 %v623_v56, 0.0  ;;  %vm734_vm11 = vcmp.eq.f32.partialorder %v1943_v29, inf  ;;  %vm736_vm12 = vcmp.eq.f32.partialorder %v1943_v29, 0.0 }
 0x175   : > { %v1949_v53 = vpop.f32.mrb[10].mxu1  ;;  %v719_v54 = vmul.f32 %v1297_v42, %v1922_v6  ;;  %v1151_v57 = vpop.f32.mrb[11].mxu0  ;;  %1306 = vrsqrt.f32 %v1970_v7  ;;  %v614_v17 = vadd.f32 %v1916_v55, %v588_v61  ;;  %v624_v25 = vadd.f32 %v1916_v55, %v598_v2 }
 0x176   : > { %v1181_v58 = vpop.f32.mrb[11].mxu1  ;;  %v651_v59 = vsel %vm650_vm1, %v1920_v5, %v649_v1  ;;  %v570_v26 = vmul.f32 2.0, %v496_v52  ;;  %vm671_vm13 = vcmp.eq.f32.partialorder %v1970_v7, inf  ;;  %vm673_vm14 = vcmp.eq.f32.partialorder %v1970_v7, 0.0  ;;  %v382_v56 = vpop.xlane.xlu1 %381 }
 0x177   : > { %v654_v62 = vsel %vm652_vm2, %v653_v40, %v651_v59  ;;  %v721_v63 = vsel %vm720_vm3, %v1922_v6, %v719_v54  ;;  %v1299_v5 = vpop.eup %1298  ;;  %v2004_v36 = vmax.f32 %v614_v17, 0.0  ;;  %v2008_v39 = vmax.f32 %v624_v25, 0.0 }
 0x178   : > { %v781_v3 = vsub.f32 0.0, %v654_v62  ;;  %v724_v4 = vsel %vm722_vm4, %v723_v50, %v721_v63  ;;  %v1972_v8 = vpop.f32.mrb[12].mxu0  ;;  %v1974_v43 = vpop.f32.mrb[12].mxu1  ;;  %v656_v16 = vmul.f32 %v1299_v5, %v1928_v23  ;;  %v580_v50 = vmul.f32 2.0, %v1949_v53 }
 0x179   : > { %v791_v9 = vsub.f32 0.0, %v724_v4  ;;  %v1154_v13 = vpop.f32.mrb[13].mxu0  ;;  %v1184_v14 = vpop.f32.mrb[13].mxu1  ;;  %vm741_vm15 = vcmp.eq.f32.partialorder %v1978_v11, inf  ;;  %vm743_vm0 = vcmp.eq.f32.partialorder %v1978_v11, 0.0  ;;  %v744_v58 = vand.u32 2147483648, %v1978_v11 }
 0x17a   : > { %v1301_v6 = vpop.eup %1300  ;;  %v1044_v15 = vmul.f32 -1.442695, %v781_v3  ;;  %v658_v0 = vsel %vm657_vm5, %v1928_v23, %v656_v16  ;;  %v737_v23 = vand.u32 2147483648, %v1943_v29  ;;  %vm678_vm1 = vcmp.eq.f32.partialorder %v2004_v36, inf }
 0x17b   : > { %v1054_v19 = vmul.f32 -1.442695, %v791_v9  ;;  %v726_v20 = vmul.f32 %v1301_v6, %v1930_v24  ;;  %v661_v30 = vsel %vm659_vm6, %v660_v60, %v658_v0  ;;  %v1303_v37 = vpop.eup %1302  ;;  %v599_v3 = vadd.f32 %v580_v50, %v382_v56 }
 0x17c   : > { %1308 = vpow2.f32 %v1044_v15  ;;  %v1991_v27 = vpop.f32.mrb[14].mxu0  ;;  %v1993_v28 = vpop.f32.mrb[14].mxu1  ;;  %v782_v35 = vsub.f32 0.0, %v661_v30  ;;  %v663_v18 = vmul.f32 %v1303_v37, %v1941_v22  ;;  %vm680_vm2 = vcmp.eq.f32.partialorder %v2004_v36, 0.0 }
 0x17d   : > { %1310 = vpow2.f32 %v1054_v19  ;;  %v728_v31 = vsel %vm727_vm7, %v1930_v24, %v726_v20  ;;  %v1157_v32 = vpop.f32.mrb[15].mxu0  ;;  %v1187_v34 = vpop.f32.mrb[15].mxu1  ;;  %v589_v24 = vadd.f32 %v570_v26, %v1903_v44  ;;  %v674_v44 = vand.u32 2147483648, %v1970_v7 }
 0x17e   : > { %v731_v12 = vsel %vm729_vm8, %v730_v10, %v728_v31  ;;  %1312 = vrsqrt.f32 %v1978_v11  ;;  %v1305_v40 = vpop.eup %1304  ;;  %v1045_v41 = vmul.f32 -1.442695, %v782_v35  ;;  %v665_v54 = vsel %vm664_vm9, %v1941_v22, %v663_v18 }
 0x17f   : > { %v792_v38 = vsub.f32 0.0, %v731_v12  ;;  %1314 = vrsqrt.f32 %v2004_v36  ;;  %v733_v1 = vmul.f32 %v1305_v40, %v1943_v29  ;;  %v668_v57 = vsel %vm666_vm10, %v667_v21, %v665_v54  ;;  %v1307_v59 = vpop.eup %1306  ;;  %v386_v54 = vpop.xlane.xlu1 %385 }
 0x180   : > { %v2013_v33 = vpop.f32.mrb[16].mxu0  ;;  %v2015_v49 = vpop.f32.mrb[16].mxu1  ;;  %1316 = vpow2.f32 %v1045_v41  ;;  %v783_v60 = vsub.f32 0.0, %v668_v57  ;;  %v615_v62 = vadd.f32 %v1916_v55, %v589_v24  ;;  %v670_v2 = vmul.f32 %v1307_v59, %v1970_v7 }
 0x181   : > { %v1055_v42 = vmul.f32 -1.442695, %v792_v38  ;;  %v1160_v51 = vpop.f32.mrb[17].mxu0  ;;  %v1190_v52 = vpop.f32.mrb[17].mxu1  ;;  %v735_v53 = vsel %vm734_vm11, %v1943_v29, %v733_v1  ;;  %v681_v9 = vand.u32 2147483648, %v2004_v36  ;;  %v571_v10 = vmul.f32 2.0, %v1972_v8 }
 0x182   : > { %v738_v61 = vsel %vm736_vm12, %v737_v23, %v735_v53  ;;  %v1046_v29 = vmul.f32 -1.442695, %v783_v60  ;;  %v672_v15 = vsel %vm671_vm13, %v1970_v7, %v670_v2  ;;  %v625_v16 = vadd.f32 %v1916_v55, %v599_v3  ;;  %v384_v41 = vpop.xlane.xlu0 %383 }
 0x183   : > { %1318 = vpow2.f32 %v1055_v42  ;;  %v793_v63 = vsub.f32 0.0, %v738_v61  ;;  %v675_v20 = vsel %vm673_vm14, %v674_v44, %v672_v15  ;;  %v2056_v21 = vmax.f32 %v615_v62, 0.0 }
 0x184   : > { %1320 = vrsqrt.f32 %v2008_v39  ;;  %v2037_v22 = vpop.f32.mrb[18].mxu0  ;;  %vm914_vm3 = vcmask 31744   ;;  %v784_v8 = vsub.f32 0.0, %v675_v20  ;;  %vm748_vm4 = vcmp.eq.f32.partialorder %v2008_v39, inf }
 0x185   : > { %v1163_v4 = vpop.f32.mrb[19].mxu0  ;;  %v1056_v6 = vmul.f32 -1.442695, %v793_v63  ;;  %1322 = vpow2.f32 %v1046_v29  ;;  %vm750_vm5 = vcmp.eq.f32.partialorder %v2008_v39, 0.0  ;;  %v2067_v26 = vmax.f32 %v625_v16, 0.0 }
 0x186   : > { %v1309_v5 = vpop.eup %1308  ;;  %v581_v7 = vmul.f32 2.0, %v1974_v43  ;;  %v1047_v30 = vmul.f32 -1.442695, %v784_v8  ;;  %v590_v12 = vadd.f32 %v571_v10, %v1905_v45  ;;  %v572_v37 = vmul.f32 2.0, %v1991_v27 }
 0x187   : > { %v1311_v13 = vpop.eup %1310  ;;  %v857_v14 = vadd.f32 1.0, %v1309_v5  ;;  %v751_v42 = vand.u32 2147483648, %v2008_v39  ;;  %v582_v56 = vmul.f32 2.0, %v1993_v28  ;;  %vm685_vm6 = vcmp.eq.f32.partialorder %v2056_v21, inf }
 0x188   : > { %v1313_v17 = vpop.eup %1312  ;;  %v867_v19 = vadd.f32 1.0, %v1311_v13  ;;  %v616_v50 = vadd.f32 %v1916_v55, %v590_v12  ;;  %v600_v51 = vadd.f32 %v581_v7, %v384_v41  ;;  %v591_v52 = vadd.f32 %v572_v37, %v1907_v46 }
 0x189   : > { %1324 = vrcp.f32 %v857_v14  ;;  %v740_v25 = vmul.f32 %v1313_v17, %v1978_v11  ;;  %v1315_v0 = vpop.eup %1314  ;;  %v601_v63 = vadd.f32 %v582_v56, %v386_v54  ;;  %vm687_vm7 = vcmp.eq.f32.partialorder %v2056_v21, 0.0 }
 0x18a   : > { %1326 = vrcp.f32 %v867_v19  ;;  %v677_v32 = vmul.f32 %v1315_v0, %v2004_v36  ;;  %v1317_v34 = vpop.eup %1316  ;;  %v2101_v53 = vmax.f32 %v616_v50, 0.0  ;;  %v617_v59 = vadd.f32 %v1916_v55, %v591_v52 }
 0x18b   : > { %1328 = vpow2.f32 %v1056_v6  ;;  %v742_v31 = vsel %vm741_vm15, %v1978_v11, %v740_v25  ;;  %v858_v38 = vadd.f32 1.0, %v1317_v34  ;;  %v688_v29 = vand.u32 2147483648, %v2056_v21 }
 0x18c   : > { %v745_v35 = vsel %vm743_vm0, %v744_v58, %v742_v31  ;;  %1330 = vrsqrt.f32 %v2056_v21  ;;  %v679_v40 = vsel %vm678_vm1, %v2004_v36, %v677_v32  ;;  %v626_v58 = vadd.f32 %v1916_v55, %v600_v51 }
 0x18d   : > { %v1319_v43 = vpop.eup %1318  ;;  %1332 = vpow2.f32 %v1047_v30  ;;  %v794_v23 = vsub.f32 0.0, %v745_v35  ;;  %v682_v11 = vsel %vm680_vm2, %v681_v9, %v679_v40  ;;  %v627_v9 = vadd.f32 %v1916_v55, %v601_v63  ;;  %v388_v35 = vpop.xlane.xlu0 %387 }
 0x18e   : > { %v1321_v18 = vpop.eup %1320  ;;  %v868_v24 = vadd.f32 1.0, %v1319_v43  ;;  %1334 = vrsqrt.f32 %v2067_v26  ;;  %v785_v27 = vsub.f32 0.0, %v682_v11  ;;  %v2111_v3 = vmax.f32 %v626_v58, 0.0 }
 0x18f   : > { %1336 = vrcp.f32 %v858_v38  ;;  %v1057_v45 = vmul.f32 -1.442695, %v794_v23  ;;  %v747_v1 = vmul.f32 %v1321_v18, %v2008_v39  ;;  %v1323_v57 = vpop.eup %1322  ;;  %v2117_v14 = vmax.f32 %v617_v59, 0.0 }
 0x190   : > { %1338 = vrcp.f32 %v868_v24  ;;  %v1048_v36 = vmul.f32 -1.442695, %v785_v27  ;;  %v859_v61 = vadd.f32 1.0, %v1323_v57  ;;  %v573_v6 = vmul.f32 2.0, %v2013_v33 }
 0x191   : > { %1340 = vpow2.f32 %v1057_v45  ;;  %v749_v44 = vsel %vm748_vm4, %v2008_v39, %v747_v1  ;;  %vm755_vm8 = vcmp.eq.f32.partialorder %v2067_v26, inf  ;;  %vm757_vm9 = vcmp.eq.f32.partialorder %v2067_v26, 0.0 }
 0x192   : > { %v752_v46 = vsel %vm750_vm5, %v751_v42, %v749_v44  ;;  %1342 = vpow2.f32 %v1048_v36  ;;  %v758_v8 = vand.u32 2147483648, %v2067_v26  ;;  %v2132_v0 = vmax.f32 %v627_v9, 0.0 }
 0x193   : > { %v1325_v60 = vpop.eup %1324  ;;  %v795_v62 = vsub.f32 0.0, %v752_v46  ;;  %1344 = vrsqrt.f32 %v2101_v53  ;;  %v583_v7 = vmul.f32 2.0, %v2015_v49  ;;  %v592_v34 = vadd.f32 %v573_v6, %v1909_v47 }
 0x194   : > { %v1327_v2 = vpop.eup %1326  ;;  %915 = vst.msk [vmem:[%s2093_s28] sm:$0xff] %vm914_vm3, %v1325_v60  ;;  %1346 = vrcp.f32 %v859_v61  ;;  %vm692_vm10 = vcmp.eq.f32.partialorder %v2101_v53, inf  ;;  %v574_v24 = vmul.f32 2.0, %v2037_v22  ;;  %v695_v11 = vand.u32 2147483648, %v2101_v53 }
 0x195   : > { %v1329_v28 = vpop.eup %1328  ;;  %925 = vst.msk [vmem:[%s2093_s28 + $0x50] sm:$0xff] %vm914_vm3, %v1327_v2  ;;  %v1058_v39 = vmul.f32 -1.442695, %v795_v62  ;;  %v618_v40 = vadd.f32 %v1916_v55, %v592_v34  ;;  %v602_v41 = vadd.f32 %v583_v7, %v388_v35  ;;  %vm694_vm11 = vcmp.eq.f32.partialorder %v2101_v53, 0.0 }
 0x196   : > { %v1331_v4 = vpop.eup %1330  ;;  %v869_v5 = vadd.f32 1.0, %v1329_v28  ;;  %v593_v22 = vadd.f32 %v574_v24, %v1911_v48  ;;  %vm762_vm12 = vcmp.eq.f32.partialorder %v2111_v3, inf  ;;  %vm764_vm13 = vcmp.eq.f32.partialorder %v2111_v3, 0.0 }
 0x197   : > { %v1333_v10 = vpop.eup %1332  ;;  %1348 = vpow2.f32 %v1058_v39  ;;  %v684_v13 = vmul.f32 %v1331_v4, %v2056_v21  ;;  %v2152_v42 = vmax.f32 %v618_v40, 0.0  ;;  %v628_v45 = vadd.f32 %v1916_v55, %v602_v41 }
 0x198   : > { %v1335_v15 = vpop.eup %1334  ;;  %1350 = vrcp.f32 %v869_v5  ;;  %v860_v16 = vadd.f32 1.0, %v1333_v10  ;;  %v765_v57 = vand.u32 2147483648, %v2111_v3  ;;  %v619_v46 = vadd.f32 %v1916_v55, %v593_v22 }
 0x199   : > { %v1337_v17 = vpop.eup %1336  ;;  %v686_v19 = vsel %vm685_vm6, %v2056_v21, %v684_v13  ;;  %v754_v20 = vmul.f32 %v1335_v15, %v2067_v26  ;;  %1352 = vrsqrt.f32 %v2111_v3  ;;  %v2165_v44 = vmax.f32 %v628_v45, 0.0 }
 0x19a   : > { %v1339_v33 = vpop.eup %1338  ;;  %916 = vst.msk [vmem:[%s2093_s28 + $0x8] sm:$0xff] %vm914_vm3, %v1337_v17  ;;  %1354 = vrcp.f32 %v860_v16  ;;  %v689_v25 = vsel %vm687_vm7, %v688_v29, %v686_v19  ;;  %vm699_vm14 = vcmp.eq.f32.partialorder %v2117_v14, inf  ;;  %vm701_vm15 = vcmp.eq.f32.partialorder %v2117_v14, 0.0 }
 0x19b   : > { %v1341_v30 = vpop.eup %1340  ;;  %926 = vst.msk [vmem:[%s2093_s28 + $0x58] sm:$0xff] %vm914_vm3, %v1339_v33  ;;  %v786_v31 = vsub.f32 0.0, %v689_v25  ;;  %v756_v32 = vsel %vm755_vm8, %v2067_v26, %v754_v20  ;;  %1356 = vrsqrt.f32 %v2117_v14  ;;  %v702_v62 = vand.u32 2147483648, %v2117_v14 }
 0x19c   : > { %v870_v12 = vadd.f32 1.0, %v1341_v30  ;;  %v759_v21 = vsel %vm757_vm9, %v758_v8, %v756_v32  ;;  %1358 = vrsqrt.f32 %v2132_v0  ;;  %v1343_v49 = vpop.eup %1342  ;;  %v2178_v63 = vmax.f32 %v619_v46, 0.0 }
 0x19d   : > { %v1049_v37 = vmul.f32 -1.442695, %v786_v31  ;;  %v796_v43 = vsub.f32 0.0, %v759_v21  ;;  %v1345_v38 = vpop.eup %1344  ;;  %v861_v23 = vadd.f32 1.0, %v1343_v49  ;;  %vm769_vm0 = vcmp.eq.f32.partialorder %v2132_v0, inf }
 0x19e   : > { %1360 = vrcp.f32 %v870_v12  ;;  %v1347_v47 = vpop.eup %1346  ;;  %v691_v26 = vmul.f32 %v1345_v38, %v2101_v53  ;;  %v772_v5 = vand.u32 2147483648, %v2132_v0  ;;  %vm771_vm1 = vcmp.eq.f32.partialorder %v2132_v0, 0.0 }
 0x19f   : > { %1362 = vpow2.f32 %v1049_v37  ;;  %v1059_v18 = vmul.f32 -1.442695, %v796_v43  ;;  %917 = vst.msk [vmem:[%s2093_s28 + $0x10] sm:$0xff] %vm914_vm3, %v1347_v47  ;;  %vm706_vm2 = vcmp.eq.f32.partialorder %v2152_v42, inf  ;;  %vm708_vm4 = vcmp.eq.f32.partialorder %v2152_v42, 0.0 }
 0x1a0   : > { %1364 = vrcp.f32 %v861_v23  ;;  %v693_v1 = vsel %vm692_vm10, %v2101_v53, %v691_v26  ;;  %vm776_vm5 = vcmp.eq.f32.partialorder %v2165_v44, inf  ;;  %v779_v21 = vand.u32 2147483648, %v2165_v44 }
 0x1a1   : > { %v1349_v27 = vpop.eup %1348  ;;  %1366 = vpow2.f32 %v1059_v18  ;;  %v696_v52 = vsel %vm694_vm11, %v695_v11, %v693_v1  ;;  %vm778_vm6 = vcmp.eq.f32.partialorder %v2165_v44, 0.0  ;;  %vm713_vm7 = vcmp.eq.f32.partialorder %v2178_v63, inf }
 0x1a2   : > { %v1351_v50 = vpop.eup %1350  ;;  %v871_v51 = vadd.f32 1.0, %v1349_v27  ;;  %1368 = vrsqrt.f32 %v2152_v42  ;;  %v787_v36 = vsub.f32 0.0, %v696_v52  ;;  %v716_v47 = vand.u32 2147483648, %v2178_v63 }
 0x1a3   : > { %v1353_v54 = vpop.eup %1352  ;;  %927 = vst.msk [vmem:[%s2093_s28 + $0x60] sm:$0xff] %vm914_vm3, %v1351_v50  ;;  %vm715_vm8 = vcmp.eq.f32.partialorder %v2178_v63, 0.0 }
 0x1a4   : > { %v1355_v56 = vpop.eup %1354  ;;  %1370 = vrcp.f32 %v871_v51  ;;  %v761_v48 = vmul.f32 %v1353_v54, %v2111_v3  ;;  %v1050_v58 = vmul.f32 -1.442695, %v787_v36 }
 0x1a5   : > { %v1357_v53 = vpop.eup %1356  ;;  %918 = vst.msk [vmem:[%s2093_s28 + $0x18] sm:$0xff] %vm914_vm3, %v1355_v56  ;;  %1372 = vrsqrt.f32 %v2165_v44 }
 0x1a6   : > { %v1359_v59 = vpop.eup %1358  ;;  %v763_v60 = vsel %vm762_vm12, %v2111_v3, %v761_v48  ;;  %v698_v61 = vmul.f32 %v1357_v53, %v2117_v14  ;;  %1374 = vpow2.f32 %v1050_v58 }
 0x1a7   : > { %v766_v55 = vsel %vm764_vm13, %v765_v57, %v763_v60  ;;  %v768_v2 = vmul.f32 %v1359_v59, %v2132_v0  ;;  %1376 = vrsqrt.f32 %v2178_v63 }
 0x1a8   : > { %v1361_v28 = vpop.eup %1360  ;;  %v797_v39 = vsub.f32 0.0, %v766_v55  ;;  %v700_v4 = vsel %vm699_vm14, %v2117_v14, %v698_v61 }
 0x1a9   : > { %v1363_v29 = vpop.eup %1362  ;;  %928 = vst.msk [vmem:[%s2093_s28 + $0x68] sm:$0xff] %vm914_vm3, %v1361_v28  ;;  %v703_v3 = vsel %vm701_vm15, %v702_v62, %v700_v4  ;;  %v770_v9 = vsel %vm769_vm0, %v2132_v0, %v768_v2  ;;  %v709_v0 = vand.u32 2147483648, %v2152_v42 }
 0x1aa   : > { %v1365_v10 = vpop.eup %1364  ;;  %v862_v13 = vadd.f32 1.0, %v1363_v29  ;;  %v1060_v6 = vmul.f32 -1.442695, %v797_v39  ;;  %v788_v15 = vsub.f32 0.0, %v703_v3  ;;  %v773_v16 = vsel %vm771_vm1, %v772_v5, %v770_v9 }
 0x1ab   : > { %v1367_v17 = vpop.eup %1366  ;;  %919 = vst.msk [vmem:[%s2093_s28 + $0x20] sm:$0xff] %vm914_vm3, %v1365_v10  ;;  %v798_v19 = vsub.f32 0.0, %v773_v16 }
 0x1ac   : > { %v1369_v20 = vpop.eup %1368  ;;  %1378 = vrcp.f32 %v862_v13  ;;  %v872_v8 = vadd.f32 1.0, %v1367_v17  ;;  %v1051_v33 = vmul.f32 -1.442695, %v788_v15 }
 0x1ad   : > { %1380 = vpow2.f32 %v1060_v6  ;;  %v1061_v14 = vmul.f32 -1.442695, %v798_v19  ;;  %v705_v25 = vmul.f32 %v1369_v20, %v2152_v42 }
 0x1ae   : > { %v1371_v7 = vpop.eup %1370  ;;  %1382 = vrcp.f32 %v872_v8 }
 0x1af   : > { %v1373_v30 = vpop.eup %1372  ;;  %929 = vst.msk [vmem:[%s2093_s28 + $0x70] sm:$0xff] %vm914_vm3, %v1371_v7  ;;  %1384 = vpow2.f32 %v1051_v33  ;;  %v707_v31 = vsel %vm706_vm2, %v2152_v42, %v705_v25 }
 0x1b0   : > { %1386 = vpow2.f32 %v1061_v14  ;;  %v710_v32 = vsel %vm708_vm4, %v709_v0, %v707_v31  ;;  %v775_v34 = vmul.f32 %v1373_v30, %v2165_v44  ;;  %v1375_v35 = vpop.eup %1374 }
 0x1b1   : > { %v789_v12 = vsub.f32 0.0, %v710_v32  ;;  %v1377_v49 = vpop.eup %1376  ;;  %v863_v37 = vadd.f32 1.0, %v1375_v35 }
 0x1b2   : > { %v777_v43 = vsel %vm776_vm5, %v2165_v44, %v775_v34  ;;  %v712_v40 = vmul.f32 %v1377_v49, %v2178_v63 }
 0x1b3   : > { %v1052_v38 = vmul.f32 -1.442695, %v789_v12  ;;  %v780_v23 = vsel %vm778_vm6, %v779_v21, %v777_v43  ;;  %1388 = vrcp.f32 %v863_v37 }
 0x1b4   : > { %v799_v41 = vsub.f32 0.0, %v780_v23  ;;  %v714_v18 = vsel %vm713_vm7, %v2178_v63, %v712_v40 }
 0x1b5   : > { %1390 = vpow2.f32 %v1052_v38  ;;  %v717_v11 = vsel %vm715_vm8, %v716_v47, %v714_v18 }
 0x1b6   : > { %v1379_v26 = vpop.eup %1378  ;;  %v1062_v24 = vmul.f32 -1.442695, %v799_v41  ;;  %v790_v45 = vsub.f32 0.0, %v717_v11 }
 0x1b7   : > { %v1381_v42 = vpop.eup %1380  ;;  %920 = vst.msk [vmem:[%s2093_s28 + $0x28] sm:$0xff] %vm914_vm3, %v1379_v26 }
 0x1b8   : > { %v1383_v27 = vpop.eup %1382  ;;  %v873_v1 = vadd.f32 1.0, %v1381_v42  ;;  %1392 = vpow2.f32 %v1062_v24  ;;  %v1053_v50 = vmul.f32 -1.442695, %v790_v45 }
 0x1b9   : > { %v1385_v22 = vpop.eup %1384  ;;  %930 = vst.msk [vmem:[%s2093_s28 + $0x78] sm:$0xff] %vm914_vm3, %v1383_v27 }
 0x1ba   : > { %v1387_v51 = vpop.eup %1386  ;;  %1394 = vrcp.f32 %v873_v1  ;;  %v864_v52 = vadd.f32 1.0, %v1385_v22 }
 0x1bb   : > { %v874_v54 = vadd.f32 1.0, %v1387_v51  ;;  %1396 = vpow2.f32 %v1053_v50 }
 0x1bc   : > { %1398 = vrcp.f32 %v864_v52 }
 0x1bd   : > { %1400 = vrcp.f32 %v874_v54  ;;  %v1389_v36 = vpop.eup %1388 }
 0x1be   : > { %921 = vst.msk [vmem:[%s2093_s28 + $0x30] sm:$0xff] %vm914_vm3, %v1389_v36 }
 0x1bf   : > { %v1391_v44 = vpop.eup %1390 }
 0x1c0   : > { %v865_v56 = vadd.f32 1.0, %v1391_v44 }
 0x1c2   : > { %v1393_v48 = vpop.eup %1392  ;;  %1402 = vrcp.f32 %v865_v56 }
 0x1c3   : > { %v875_v57 = vadd.f32 1.0, %v1393_v48 }
 0x1c4   : > { %v1395_v46 = vpop.eup %1394 }
 0x1c5   : > { %v1397_v53 = vpop.eup %1396  ;;  %931 = vst.msk [vmem:[%s2093_s28 + $0x80] sm:$0xff] %vm914_vm3, %v1395_v46  ;;  %1404 = vrcp.f32 %v875_v57 }
 0x1c6   : > { %v1399_v58 = vpop.eup %1398  ;;  %v866_v59 = vadd.f32 1.0, %v1397_v53 }
 0x1c7   : > { %v1401_v60 = vpop.eup %1400  ;;  %922 = vst.msk [vmem:[%s2093_s28 + $0x38] sm:$0xff] %vm914_vm3, %v1399_v58 }
 0x1c8   : > { %932 = vst.msk [vmem:[%s2093_s28 + $0x88] sm:$0xff] %vm914_vm3, %v1401_v60  ;;  %1406 = vrcp.f32 %v866_v59 }
 0x1cc   : > { %v1403_v61 = vpop.eup %1402 }
 0x1cd   : > { %923 = vst.msk [vmem:[%s2093_s28 + $0x40] sm:$0xff] %vm914_vm3, %v1403_v61 }
 0x1cf   : > { %v1405_v62 = vpop.eup %1404 }
 0x1d0   : > { %933 = vst.msk [vmem:[%s2093_s28 + $0x90] sm:$0xff] %vm914_vm3, %v1405_v62 }
 0x1d2   : > { %v1407_v63 = vpop.eup %1406 }
 0x1d3   : > { %924 = vst.msk [vmem:[%s2093_s28 + $0x48] sm:$0xff] %vm914_vm3, %v1407_v63 }
 0x1d4 PF: > { %p17_p9 = scmp.ge.s32.totalorder %s1617_s25, 4   ;;  %s2260_s15 = smov %s1530_s16 }
 0x1d5   : > { %s2261_s16 = smov %s1534_s17  ;;  %s2262_s17 = smov %s1646_s14 }
 0x1d6   : > { %s2263_s18 = smov %s1617_s25  ;;  %19 = sbr.rel (!%p17_p9) target bundleno = 5 (0x5), region = 93 }
 0x1dd   :  { %956 = vsyncpa [#allocation3], 1 }
 0x1de   :  { %958 = vsyncpa [#allocation3 + $0x1], 1 }
 0x1df   :  { %959 = vsyncpa [#allocation5], 1 }
 0x1e0   :  { %961 = vsyncpa [#allocation5 + $0x1], 1 }

</bundles_post_ra>
